<compile_context>
chip_gen: v7x
topology: tpu7x:2x2x1
jax: 0.10.0
libtpu: 0.0.40
codegen_flags: <defaults>
</compile_context>

<pallas_src>
import functools

import jax
import jax.numpy as jnp
from jax.experimental import pallas as pl
from jax.experimental.pallas import tpu as pltpu


# ---------------------------------------------------------------------------
# Kernels
# ---------------------------------------------------------------------------

def _frnorm2d_single_pass_kernel(x_ref, w_ref, b_ref, eps_ref, o_ref):
    """Full H*W row of a (tn, tc) tile is resident: one-pass normalize.

    x_ref/o_ref: (tn, tc, HW); w_ref/b_ref: (1, tc); eps_ref: (1, 1) (|eps|).
    """
    eps = eps_ref[0, 0]
    x32 = x_ref[...].astype(jnp.float32)                       # (tn, tc, HW)
    nu2 = jnp.mean(x32 * x32, axis=-1, keepdims=True)          # (tn, tc, 1)
    inv = jax.lax.rsqrt(nu2 + eps)
    scale = w_ref[...].astype(jnp.float32)[:, :, None] * inv   # (1|tn, tc, 1)
    bias = b_ref[...].astype(jnp.float32)[:, :, None]
    # Re-read x for the normalize so a full-block f32 temp need not stay live
    # across both uses (matters for bf16/int8 inputs).
    o_ref[...] = (x_ref[...].astype(jnp.float32) * scale + bias).astype(o_ref.dtype)


def _frnorm2d_two_pass_kernel(x_ref, w_ref, b_ref, eps_ref, o_ref, ssum_ref,
                              *, hw_total, hw_block, mask_tail):
    """HW-tiled path: innermost grid axis has 2*n_hw steps.

    Steps [0, n_hw):      accumulate sum(x^2) over HW blocks into ssum_ref.
    Step  n_hw:           fold ssum -> per-channel scale = w * rsqrt(mean+eps).
    Steps [n_hw, 2*n_hw): re-read each HW block, normalize, write output.
    """
    s = pl.program_id(2)
    n_hw = pl.num_programs(2) // 2

    @pl.when(s == 0)
    def _zero():
        ssum_ref[...] = jnp.zeros_like(ssum_ref)

    @pl.when(s < n_hw)
    def _accumulate():
        x32 = x_ref[...].astype(jnp.float32)                  # (1, tc, t_hw)
        sq = x32 * x32
        if mask_tail:
            # Mask out-of-range lanes of the trailing partial HW block so the
            # (undefined) padded values never enter the reduction.
            col = jax.lax.broadcasted_iota(jnp.int32, sq.shape, dimension=2)
            valid = (s * hw_block + col) < hw_total
            sq = jnp.where(valid, sq, 0.0)
        ssum_ref[...] += jnp.sum(sq, axis=-1, keepdims=True)

    @pl.when(s == n_hw)
    def _finalize_scale():
        nu2 = ssum_ref[...] * (1.0 / hw_total)
        inv = jax.lax.rsqrt(nu2 + eps_ref[0, 0])
        # Reuse the accumulator buffer to hold the folded per-channel scale.
        ssum_ref[...] = w_ref[...].astype(jnp.float32)[:, :, None] * inv

    @pl.when(s >= n_hw)
    def _normalize():
        x32 = x_ref[...].astype(jnp.float32)
        bias = b_ref[...].astype(jnp.float32)[:, :, None]
        o_ref[...] = (x32 * ssum_ref[...] + bias).astype(o_ref.dtype)


# ---------------------------------------------------------------------------
# Tiling / per-generation configuration
# ---------------------------------------------------------------------------

def _pick_config(N, C, HW, itemsize, block_elems=None):
    """Choose (mode, tn, tc, t_hw, vmem_limit) for the given problem."""
    try:
        vmem_cap = int(pltpu.get_tpu_info().vmem_capacity_bytes)
    except Exception:  # unknown generation / interpret mode
        vmem_cap = 0

    if vmem_cap > (64 << 20):
        # v5e / v6e class: 128 MiB physical VMEM.
        vmem_limit = 64 << 20
    else:
        # v7x class (64 MiB per TensorCore) or unknown: stay conservative.
        vmem_limit = 48 << 20

    if block_elems is None:
        # x-block element budget.  Footprint model per element: double-buffered
        # input + double-buffered output + ~2 block-sized f32 temps from the
        # in-kernel upcast; keep ~45% of the scoped limit as headroom.
        per_elem_bytes = 4 * itemsize + 8
        block_elems = int((vmem_limit * 0.55) // per_elem_bytes)
        block_elems = max(block_elems, 128 * 128)

    # Account for lane padding: the last dim is padded to a multiple of 128.
    hw_pad = ((HW + 127) // 128) * 128

    # --- Path 1: the whole (C, HW) row of a sample fits in one block. -------
    row_elems = C * hw_pad
    if row_elems <= block_elems:
        tn = max(1, min(N, block_elems // row_elems))
        if N >= 2:
            # Keep >= 2 grid steps on the parallel N axis (v7x has 2 TCs).
            tn = min(tn, (N + 1) // 2)
        return {"mode": "single", "tn": tn, "tc": C, "t_hw": None,
                "vmem_limit": vmem_limit}

    # --- Path 2: tile channels only (x is still read exactly once). ---------
    # tc must be a multiple of 128 when tc < C (weight/bias lane constraint).
    tc_cap = (block_elems // hw_pad) // 128 * 128
    if C > 128 and tc_cap >= 128:
        return {"mode": "single", "tn": 1, "tc": min(C, tc_cap), "t_hw": None,
                "vmem_limit": vmem_limit}

    # --- Path 3: large feature map -> tile HW (two-pass kernel). ------------
    tc = C if C <= 128 else 128
    t_hw = max(128, (block_elems // tc) // 128 * 128)
    t_hw = min(t_hw, hw_pad)
    return {"mode": "two_pass", "tn": 1, "tc": tc, "t_hw": t_hw,
            "vmem_limit": vmem_limit}


# ---------------------------------------------------------------------------
# Wrapper
# ---------------------------------------------------------------------------

def frnorm2d(x, weight, bias, eps, *, block_elems=None):
    """x: (N, C, H, W); weight/bias: (1, C, 1, 1); eps: (1,).

    `block_elems` is a test/tuning hook overriding the per-generation x-block
    element budget.
    """
    N, C, H, W = x.shape
    HW = H * W
    itemsize = x.dtype.itemsize

    # Free reshapes on contiguous NCHW data.
    x3 = x.reshape(N, C, HW)
    w2 = weight.reshape(1, C)
    b2 = bias.reshape(1, C)
    eps_abs = jnp.abs(eps).astype(jnp.float32).reshape(1, 1)

    cfg = _pick_config(N, C, HW, itemsize, block_elems=block_elems)
    vmem_limit = cfg["vmem_limit"]

    flops = int(5 * N * C * HW)
    transcendentals = int(N * C)

    if cfg["mode"] == "single":
        tn, tc = cfg["tn"], cfg["tc"]
        # Grid order (C-tiles, N-tiles): innermost axis leaves the weight/bias
        # block index unchanged, so their DMAs are not re-issued.
        grid = (pl.cdiv(C, tc), pl.cdiv(N, tn))
        cost = pl.CostEstimate(flops=flops, transcendentals=transcendentals,
                               bytes_accessed=int(2 * N * C * HW * itemsize))
        out = pl.pallas_call(
            _frnorm2d_single_pass_kernel,
            out_shape=jax.ShapeDtypeStruct((N, C, HW), x.dtype),
            grid_spec=pltpu.PrefetchScalarGridSpec(
                num_scalar_prefetch=0,
                grid=grid,
                in_specs=[
                    pl.BlockSpec((tn, tc, HW), lambda c, n: (n, c, 0)),   # x
                    pl.BlockSpec((1, tc), lambda c, n: (0, c)),           # weight
                    pl.BlockSpec((1, tc), lambda c, n: (0, c)),           # bias
                    pl.BlockSpec((1, 1), lambda c, n: (0, 0)),            # |eps|
                ],
                out_specs=pl.BlockSpec((tn, tc, HW), lambda c, n: (n, c, 0)),
            ),
            compiler_params=pltpu.CompilerParams(
                dimension_semantics=("parallel", "parallel"),
                vmem_limit_bytes=vmem_limit,
            ),
            cost_estimate=cost,
        )(x3, w2, b2, eps_abs)
    else:
        tc, t_hw = cfg["tc"], cfg["t_hw"]
        n_hw = pl.cdiv(HW, t_hw)                 # Python int
        mask_tail = (HW % t_hw) != 0
        kernel = functools.partial(
            _frnorm2d_two_pass_kernel,
            hw_total=HW, hw_block=t_hw, mask_tail=mask_tail)
        # Innermost "arbitrary" axis: n_hw reduction steps + n_hw write steps.
        grid = (pl.cdiv(C, tc), N, 2 * n_hw)
        cost = pl.CostEstimate(flops=flops, transcendentals=transcendentals,
                               bytes_accessed=int(3 * N * C * HW * itemsize))
        out = pl.pallas_call(
            kernel,
            out_shape=jax.ShapeDtypeStruct((N, C, HW), x.dtype),
            grid_spec=pltpu.PrefetchScalarGridSpec(
                num_scalar_prefetch=0,
                grid=grid,
                in_specs=[
                    pl.BlockSpec((1, tc, t_hw),
                                 lambda c, n, s: (n, c, s % n_hw)),        # x
                    pl.BlockSpec((1, tc), lambda c, n, s: (0, c)),         # weight
                    pl.BlockSpec((1, tc), lambda c, n, s: (0, c)),         # bias
                    pl.BlockSpec((1, 1), lambda c, n, s: (0, 0)),          # |eps|
                ],
                out_specs=pl.BlockSpec(
                    (1, tc, t_hw),
                    lambda c, n, s: (n, c, jnp.maximum(s - n_hw, 0))),
                scratch_shapes=[pltpu.VMEM((1, tc, 1), jnp.float32)],
            ),
            compiler_params=pltpu.CompilerParams(
                dimension_semantics=("parallel", "parallel", "arbitrary"),
                vmem_limit_bytes=vmem_limit,
            ),
            cost_estimate=cost,
        )(x3, w2, b2, eps_abs)

    return out.reshape(N, C, H, W)


def frnorm2d_ref(x, weight, bias, eps):
    nu2 = jnp.mean(x * x, axis=(2, 3), keepdims=True)
    xn = x * jax.lax.rsqrt(nu2 + jnp.abs(eps).reshape(1, 1, 1, 1))
    return weight * xn + bias


# ---------------------------------------------------------------------------
# Self-test
# ---------------------------------------------------------------------------

if __name__ == "__main__":
    key = jax.random.PRNGKey(0)
    k1, k2, k3, kw, kb = jax.random.split(key, 5)

    # 1) Nominal small shape (single-pass path), module's default param init.
    N, C, H, W = 2, 4, 16, 16
    x = jax.random.normal(k1, (N, C, H, W), dtype=jnp.float32)
    weight = jnp.ones((1, C, 1, 1), jnp.float32)    # nn.init.ones_
    bias = jnp.zeros((1, C, 1, 1), jnp.float32)     # nn.init.zeros_
    eps = jnp.full((1,), 1e-6, jnp.float32)         # nn.init.constant_
    out = jax.block_until_ready(frnorm2d(x, weight, bias, eps))
    ref = frnorm2d_ref(x, weight, bias, eps)
    assert out.shape == (N, C, H, W)
    assert jnp.allclose(out, ref, atol=1e-4, rtol=1e-4)

    # 2) Force the HW-tiled two-pass path, incl. masked tail (400 % 256 != 0),
    #    with non-trivial weight/bias.
    x2 = jax.random.normal(k2, (2, 4, 20, 20), dtype=jnp.float32)
    w2p = jax.random.normal(kw, (1, 4, 1, 1), dtype=jnp.float32)
    b2p = jax.random.normal(kb, (1, 4, 1, 1), dtype=jnp.float32)
    out2 = jax.block_until_ready(frnorm2d(x2, w2p, b2p, eps, block_elems=1024))
    ref2 = frnorm2d_ref(x2, w2p, b2p, eps)
    assert jnp.allclose(out2, ref2, atol=1e-4, rtol=1e-4)

    # 3) Force channel tiling with C % 128 != 0 (masked trailing channels).
    C3 = 192
    x3 = jax.random.normal(k3, (1, C3, 8, 16), dtype=jnp.float32)
    w3 = jnp.ones((1, C3, 1, 1), jnp.float32)
    b3 = jnp.zeros((1, C3, 1, 1), jnp.float32)
    out3 = jax.block_until_ready(frnorm2d(x3, w3, b3, eps, block_elems=16384))
    ref3 = frnorm2d_ref(x3, w3, b3, eps)
    assert jnp.allclose(out3, ref3, atol=1e-4, rtol=1e-4)

    print("KERNEL_OK")
</pallas_src>

<mosaic_0001>
module attributes {stable_mosaic.version = 11 : i64} {
  func.func @_frnorm2d_single_pass_kernel(%arg0: i32, %arg1: i32, %arg2: memref<1x4x256xf32, #tpu.memory_space<vmem>>, %arg3: memref<1x4xf32, #tpu.memory_space<vmem>>, %arg4: memref<1x4xf32, #tpu.memory_space<vmem>>, %arg5: memref<1x1xf32, #tpu.memory_space<vmem>>, %arg6: memref<1x4x256xf32, #tpu.memory_space<vmem>>) attributes {dimension_semantics = [#tpu.dimension_semantics<parallel>, #tpu.dimension_semantics<parallel>], iteration_bounds = array<i64: 1, 2>, scalar_prefetch = 0 : i64, scratch_operands = 0 : i64, tpu.core_type = #tpu.core_type<tc>, window_params = [{transform_indices = @transform_0, window_bounds = array<i64: 1, 4, 256>}, {transform_indices = @transform_1, window_bounds = array<i64: 1, 4>}, {transform_indices = @transform_2, window_bounds = array<i64: 1, 4>}, {pipeline_mode = #tpu.pipeline_mode<synchronous>, transform_indices = @transform_3, window_bounds = array<i64: 1, 1>}, {transform_indices = @transform_4, window_bounds = array<i64: 1, 4, 256>}]} {
    %c0 = arith.constant 0 : index
    %c0_0 = arith.constant 0 : index
    %0 = vector.load %arg5[%c0, %c0_0] : memref<1x1xf32, #tpu.memory_space<vmem>>, vector<1x1xf32>
    %1 = vector.extract %0[0, 0] : f32 from vector<1x1xf32>
    %c0_1 = arith.constant 0 : index
    %c0_2 = arith.constant 0 : index
    %c0_3 = arith.constant 0 : index
    %2 = vector.load %arg2[%c0_1, %c0_2, %c0_3] : memref<1x4x256xf32, #tpu.memory_space<vmem>>, vector<1x4x256xf32>
    %3 = arith.mulf %2, %2 : vector<1x4x256xf32>
    %cst = arith.constant dense<0.000000e+00> : vector<1x4xf32>
    %4 = vector.multi_reduction <add>, %3, %cst [2] : vector<1x4x256xf32> to vector<1x4xf32>
    %5 = vector.shape_cast %4 : vector<1x4xf32> to vector<1x4x1xf32>
    %cst_4 = arith.constant 2.560000e+02 : f32
    %6 = vector.broadcast %cst_4 : f32 to vector<1x4x1xf32>
    %7 = arith.divf %5, %6 : vector<1x4x1xf32>
    %8 = vector.broadcast %1 : f32 to vector<1x4x1xf32>
    %9 = arith.addf %7, %8 : vector<1x4x1xf32>
    %10 = math.rsqrt %9 : vector<1x4x1xf32>
    %c0_5 = arith.constant 0 : index
    %c0_6 = arith.constant 0 : index
    %11 = vector.load %arg3[%c0_5, %c0_6] : memref<1x4xf32, #tpu.memory_space<vmem>>, vector<1x4xf32>
    %12 = vector.shape_cast %11 : vector<1x4xf32> to vector<1x4x1xf32>
    %13 = arith.mulf %12, %10 : vector<1x4x1xf32>
    %c0_7 = arith.constant 0 : index
    %c0_8 = arith.constant 0 : index
    %14 = vector.load %arg4[%c0_7, %c0_8] : memref<1x4xf32, #tpu.memory_space<vmem>>, vector<1x4xf32>
    %15 = vector.shape_cast %14 : vector<1x4xf32> to vector<1x4x1xf32>
    %c0_9 = arith.constant 0 : index
    %c0_10 = arith.constant 0 : index
    %c0_11 = arith.constant 0 : index
    %16 = vector.load %arg2[%c0_9, %c0_10, %c0_11] : memref<1x4x256xf32, #tpu.memory_space<vmem>>, vector<1x4x256xf32>
    %17 = vector.broadcast %13 : vector<1x4x1xf32> to vector<1x4x256xf32>
    %18 = arith.mulf %16, %17 : vector<1x4x256xf32>
    %19 = vector.broadcast %15 : vector<1x4x1xf32> to vector<1x4x256xf32>
    %20 = arith.addf %18, %19 : vector<1x4x256xf32>
    %c0_12 = arith.constant 0 : index
    %c0_13 = arith.constant 0 : index
    %c0_14 = arith.constant 0 : index
    %21 = vector.load %arg6[%c0_12, %c0_13, %c0_14] : memref<1x4x256xf32, #tpu.memory_space<vmem>>, vector<1x4x256xf32>
    tpu.vector_store %arg6[%c0_12, %c0_13, %c0_14], %20 {strides = array<i32>} : memref<1x4x256xf32, #tpu.memory_space<vmem>>, vector<1x4x256xf32>,
    return
  }
  func.func @transform_0(%arg0: i32, %arg1: i32) -> (i32, i32, i32) {
    %c0_i32 = arith.constant 0 : i32
    %c0_i32_0 = arith.constant 0 : i32
    return %arg1, %arg0, %c0_i32 : i32, i32, i32
  }
  func.func @transform_1(%arg0: i32, %arg1: i32) -> (i32, i32) {
    %c0_i32 = arith.constant 0 : i32
    %c0_i32_0 = arith.constant 0 : i32
    return %c0_i32, %arg0 : i32, i32
  }
  func.func @transform_2(%arg0: i32, %arg1: i32) -> (i32, i32) {
    %c0_i32 = arith.constant 0 : i32
    %c0_i32_0 = arith.constant 0 : i32
    return %c0_i32, %arg0 : i32, i32
  }
  func.func @transform_3(%arg0: i32, %arg1: i32) -> (i32, i32) {
    %c0_i32 = arith.constant 0 : i32
    %c0_i32_0 = arith.constant 0 : i32
    %c0_i32_1 = arith.constant 0 : i32
    return %c0_i32, %c0_i32_0 : i32, i32
  }
  func.func @transform_4(%arg0: i32, %arg1: i32) -> (i32, i32, i32) {
    %c0_i32 = arith.constant 0 : i32
    %c0_i32_0 = arith.constant 0 : i32
    return %arg1, %arg0, %c0_i32 : i32, i32, i32
  }
}

</mosaic_0001>

<bundles_post_ra>
// kernel: tpu_custom_call.1
= control target key start
LH: loop header
LB: loop body
LE: loop exit
PB: predicated region body
PF: predicated region fallthrough
CT: control target
= control target key end

     0   :  { %s858_s0 = inlined_call_operand.hbm [shape: f32[2,4,256], index: 0, kind: input, shape index: {}]   ;;  %s859_s1 = inlined_call_operand.vmem [shape: f32[1,4], index: 1, kind: input, shape index: {}]   ;;  %s860_s2 = inlined_call_operand.vmem [shape: f32[1,4], index: 2, kind: input, shape index: {}]   ;;  %s861_s3 = inlined_call_operand.<no memory space> [shape: f32[1,1], index: 3, kind: input, shape index: {}]   ;;  %s862_s4 = inlined_call_operand.hbm [shape: f32[2,4,256], index: 4, kind: output, shape index: {}]  }
   0x1   :  { %v9_v0 = vstv %s861_s3 }
   0x2   :  { %10 = vst [vmem:[#allocation2] sm:$0x1] %v9_v0 }
   0x3   :  { %11 = vsyncpa [#allocation4], 0 }
   0x4   :  { %13 = vsyncpa [#allocation4 + $0x1], 0 }
   0x5   :  { %14 = vsyncpa [#allocation5], 0 }
   0x6   :  { %16 = vsyncpa [#allocation5 + $0x1], 0  ;;  %s676_s17 = smov 0   ;;  %s678_s18 = smov 0  }
   0x7   :  { %s680_s19 = smov 0   ;;  %s682_s20 = smov 0  }
   0x8   :  { %s684_s21 = smov 0   ;;  %s686_s22 = smov 0  }
   0x9 LB: > { %s443_s3 = sadd.s32 4294967295, %s643_s22   ;;  %s444_s23 = sadd.s32 4294967294, %s643_s22   ;;  %s643_s22 = sphi %s686_s22, %s22_s22   ;;  %s639_s21 = sphi %s684_s21, %s878_s21   ;;  %s635_s20 = sphi %s682_s20, %s877_s20   ;;  %s631_s19 = sphi %s680_s19, %s876_s19   ;;  %s627_s18 = sphi %s678_s18, %s875_s18   ;;  %s623_s17 = sphi %s676_s17, %s874_s17  }
   0xa   : > { %s31_s24 = sadd.s32 1, %s639_s21  ;;  %s43_s25 = sadd.s32 1, %s631_s19 }
   0xb   : > { %p32_p0 = scmp.ge.s32.totalorder %s31_s24, 2  ;;  %p50_p1 = scmp.ne.s32.totalorder %s631_s19, %s627_s18 }
   0xc   : > { %p51_p2 = scmp.eq.s32.totalorder %s643_s22, 0  ;;  %p56_p3 = scmp.ne.s32.totalorder %s627_s18, %s623_s17 }
   0xd   : > { %s880_s24 = smov (%p32_p0, %s31_s24), 0  ;;  %p57_p5 = scmp.eq.s32.totalorder %s443_s3, 0 }
   0xe   : > { %p717_p4 = por %p51_p2, %p50_p1  ;;  %s38_s27 = ssub.s32 %s639_s21, %s880_s24 }
   0xf   : > { %p155_p6 = scmp.eq.s32.totalorder %s443_s3, 1  ;;  %p41_p7 = scmp.eq.s32.totalorder %s38_s27, 0 }
  0x10   : > { %p723_p8 = por %p57_p5, %p56_p3  ;;  %p161_p10 = scmp.eq.s32.totalorder %s444_s23, 1 }
  0x11   : > { %p727_p9 = por %p155_p6, %p50_p1  ;;  %p478_p13 = scmp.lt.s32.totalorder %s643_s22, 2 }
  0x12   : > { %s732_s30 = scalar_select %p41_p7, %s631_s19, %s43_s25  }
  0x13   : > { %s866_s29 = scalar_select %p727_p9, 1, 0 }
  0x14   : > { %p734_p11 = por %p161_p10, %p56_p3  ;;  %s196_s6 = sand.u32 1, %s631_s19  }
  0x15   : > { %s449_s7 = sshll.u32 %s196_s6, 3  ;;  %s462_s8 = sshll.u32 %s639_s21, 7 }
  0x16   : > { %s867_s5 = scalar_select %p734_p11, 1, 0 }
  0x17   : > { %s745_s11 = scalar_lea.hbm %s858_s0, %s462_s8  ;;  %s200_s12 = scalar_lea.vmem [#allocation3], %s449_s7 }
  0x18   : > { %s210_s13 = sshll.u32 %s200_s12, 4  ;;  %p751_p0 = pnand %p478_p13, %p717_p4  ;;  %s747_s13 = int_to_ptr.vmem [resolvable:$true] %s210_s13 }
  0x19   : > { %s197_s15 = scalar_lea.sflag [#allocation4], %s196_s6  ;;  %s531_s16 = scalar_lea.hbm %s745_s11, 128 }
  0x1a   : > { %p532_p3 = scmp.ne.s32.totalorder %s745_s11, %s531_s16  ;;  %p533_p5 = pneg %p751_p0 }
  0x1b   : > { %s536_s25 = scalar_lea.hbm %s858_s0, 256  ;;  %p537_p4 = scmp.lt.u32.totalorder %s745_s11, %s858_s0 }
  0x1c   : > { %p534_p6 = pnand %p533_p5, %p532_p3  ;;  %p538_p10 = scmp.lt.u32.totalorder %s536_s25, %s531_s16 }
  0x1d   : > { %p540_p12 = scmp.lt.u32.totalorder %s531_s16, %s745_s11 }
  0x1e   : > { %p535_p7 = pneg %p534_p6  ;;  %p539_p13 = por %p538_p10, %p537_p4 }
  0x20   : > { %p541_p1 = por %p540_p12, %p539_p13 }
  0x22   : > { %p542_p2 = pnand %p541_p1, %p535_p7 }
  0x24   : > { %545 = shalt.err (!%p542_p2)
}
  0x25   : > { %s546_s6 = scalar_lea.vmem %s747_s13, 128  ;;  %s645_s7 = smov [#allocation3]  }
  0x26   : > { %p547_p3 = scmp.ne.s32.totalorder %s747_s13, %s546_s6  ;;  %s551_s8 = sshll.u32 %s645_s7, 4  ;;  %s552_s8 = int_to_ptr.vmem [resolvable:$false] %s551_s8 }
  0x27   : > { %s553_s9 = scalar_lea.vmem %s552_s8, 256  ;;  %p554_p9 = scmp.lt.s32.totalorder %s747_s13, %s552_s8 }
  0x28   : > { %p549_p6 = pnand %p547_p3, %p533_p5  ;;  %p555_p4 = scmp.lt.s32.totalorder %s553_s9, %s546_s6 }
  0x2a   : > { %p550_p11 = pneg %p549_p6  ;;  %p556_p10 = por %p555_p4, %p554_p9 }
  0x2c   : > { %p557_p12 = pnand %p556_p10, %p550_p11 }
  0x2e   : > { %560 = shalt.err (!%p557_p12)
}
  0x2f   : > { %473 = dma.hbm_to_vmem [thread:$0]  (!%p751_p0), %s745_s11, 128, %s747_s13, %s197_s15  }
  0x30   : > { %p869_p1 = scmp.lt.s32.totalorder %s643_s22, 3  ;;  %p870_p2 = scmp.ge.s32.totalorder %s643_s22, 1 }
  0x32   : > { %p216_p5 = pnand %p870_p2, %p869_p1 }
  0x33   : > { %s787_s10 = sand.u32 (!%p216_p5), 1, %s627_s18  }
  0x34   : > { %219 = sbr.rel (%p216_p5) target bundleno = 247 (0xf7), region = 36  ;;  %s453_s12 = sshll.u32 (!%p216_p5), %s787_s10, 3 }
  0x35   : > { %s222_s16 = scalar_lea.sflag (!%p216_p5), [#allocation4], %s787_s10  ;;  %s225_s14 = scalar_lea.vmem (!%p216_p5), [#allocation3], %s453_s12 }
  0x3b   : > { %614 = dma.done.wait (%p723_p8), %s222_s16, 128  }
  0x3c   : > { %616 = vsyncadd (%p723_p8), %s222_s16, 4294967168  ;;  %v264_v1 = vld [vmem:[%s225_s14] sm:$0xff]  ;;  %vm269_vm0 = vcmask 1043456   ;;  %v456_v2 = vld [vmem:[%s860_s2] ss:$0 sm:$0xff]  ;;  %v301_v16 = vlaneseq  ;;  %s463_s23 = sshll.u32 %s635_s20, 7 }
  0x3d   : > { %v265_v3 = vmul.f32 %v264_v1, %v264_v1  ;;  %295 = vbcast.lane.b32.xlu1 %v456_v2, 256  ;;  %v262_v4 = vld [vmem:[#allocation2] sm:$0x1]  ;;  %v646_v14 = vmov 839922192   ;;  %s255_s25 = scalar_lea.vmem [#allocation6], %s453_s12  ;;  %s809_s7 = scalar_lea.hbm %s862_s4, %s463_s23 }
  0x3e   : > { %464 = vpush %v262_v4  ;;  %v455_v9 = vld [vmem:[%s859_s1] ss:$0 sm:$0xff]  ;;  %v299_v15 = vunpack.c.l.s4 %v646_v14  ;;  %v302_v18 = vshrl.u32 %v301_v16, 7  ;;  %s335_s26 = sshll.u32 %s255_s25, 4  ;;  %s319_s8 = scalar_lea.sflag [#allocation5], %s787_s10  ;;  %s811_s26 = int_to_ptr.vmem [resolvable:$true] %s335_s26 }
  0x3f   : > { %v267_v5 = vcombine.high %v265_v3, %v265_v3  ;;  %v270_v6 = vsel %vm269_vm0, %v265_v3, 0.0  ;;  %s561_s9 = scalar_lea.vmem %s811_s26, 128  ;;  %p871_p9 = scmp.ne.s32.totalorder %s866_s29, 0 }
  0x40   : > { %v300_v17 = vunpack.c.0.s8 %v299_v15  ;;  %p562_p8 = scmp.ne.s32.totalorder %s811_s26, %s561_s9  ;;  %s647_s20 = smov [#allocation6]  }
  0x41   : > { %v271_v7 = vsel %vm269_vm0, %v267_v5, 0.0  ;;  %s565_s12 = sshll.u32 %s647_s20, 4  ;;  %s566_s12 = int_to_ptr.vmem [resolvable:$false] %s565_s12 }
  0x42   : > { %v272_v8 = vadd.f32 %v271_v7, %v270_v6  ;;  %v303_v20 = vsub.s32 %v300_v17, %v302_v18  ;;  %p563_p11 = pnand %p562_p8, %p871_p9  ;;  %s567_s16 = scalar_lea.vmem %s566_s12, 256 }
  0x43   : > { %p568_p7 = scmp.lt.s32.totalorder %s811_s26, %s566_s12  ;;  %p569_p13 = scmp.lt.s32.totalorder %s567_s16, %s561_s9 }
  0x44   : > { %273 = vadd.xlane.f32.xlu0 %v272_v8  ;;  %p564_p0 = pneg %p563_p11 }
  0x45   : > { %p570_p3 = por %p569_p13, %p568_p7 }
  0x47   : > { %p571_p6 = pnand %p570_p3, %p564_p0 }
  0x5a   : > { %286 = vbcast.lane.b32.xlu0 %v455_v9, 256 }
  0x6f   : > { %s465_s28 = spop %464 }
  0x70   : > { %v277_v11 = vstv %s465_s28 }
  0xaf   : > { %v296_v22 = vpop.permute.xlu1 %295 }
  0xb0   : > { %v314_v25 = vrot.slane %v296_v22, %v303_v20 }
  0xd1   : > { %v274_v10 = vpop.xlane.xlu0 %273 }
  0xd2   : > { %v276_v12 = vmul.f32 0.00390625, %v274_v10 }
  0xd4   : > { %v278_v13 = vadd.f32 %v277_v11, %v276_v12 }
  0xd5   : > { %v287_v19 = vpop.permute.xlu0 %286 }
  0xd6   : > { %529 = vrsqrt.f32 %v278_v13 }
  0xe0   : > { %v530_v21 = vpop.eup %529 }
  0xe1   : > { %v288_v23 = vmul.f32 %v530_v21, %v287_v19 }
  0xe3   : > { %v304_v24 = vrot.slane %v288_v23, %v303_v20 }
  0xe5   : > { %v306_v26 = vmul.f32 %v304_v24, %v264_v1 }
  0xe7   : > { %v316_v27 = vadd.f32 %v314_v25, %v306_v26 }
  0xe9   : > { %317 = vst [vmem:[%s255_s25] sm:$0xff] %v316_v27 }
  0xea   : > { %574 = shalt.err (!%p571_p6)
}
  0xeb   : > { %s575_s10 = scalar_lea.hbm %s809_s7, 128  ;;  %s579_s13 = scalar_lea.hbm %s862_s4, 256 }
  0xec   : > { %p576_p4 = scmp.ne.s32.totalorder %s809_s7, %s575_s10  ;;  %p580_p1 = scmp.lt.u32.totalorder %s809_s7, %s862_s4 }
  0xed   : > { %p581_p2 = scmp.lt.u32.totalorder %s579_s13, %s575_s10  ;;  %p583_p8 = scmp.lt.u32.totalorder %s575_s10, %s809_s7 }
  0xee   : > { %p577_p10 = pnand %p576_p4, %p871_p9 }
  0xef   : > { %p582_p5 = por %p581_p2, %p580_p1 }
  0xf0   : > { %p578_p12 = pneg %p577_p10 }
  0xf1   : > { %p584_p11 = por %p583_p8, %p582_p5 }
  0xf3   : > { %p585_p0 = pnand %p584_p11, %p578_p12 }
  0xf5   : > { %588 = shalt.err (!%p585_p0)
}
  0xf6   : > { %468 = dma.vmem_to_hbm [thread:$0]  (%p871_p9), %s811_s26, 128, %s809_s7, %s319_s8  }
  0xf7 PF: > { %s347_s28 = sand.u32 1, %s623_s17   ;;  %p872_p7 = scmp.ne.s32.totalorder %s867_s5, 0 }
  0xf8   : > { %p873_p13 = scmp.ge.s32.totalorder %s643_s22, 2  ;;  %s348_s23 = scalar_lea.sflag [#allocation5], %s347_s28 }
  0xfa   : > { %p475_p3 = pnand %p873_p13, %p872_p7 }
  0xfc   : > { %618 = dma.done.wait (!%p475_p3), %s348_s23, 128  }
  0xfd   : > { %620 = vsyncadd (!%p475_p3), %s348_s23, 4294967168  ;;  %s22_s22 = sadd.s32 1, %s643_s22   ;;  %s874_s17 = smov %s627_s18 }
  0xfe   : > { %p19_p6 = scmp.ge.s32.totalorder %s22_s22, 4   ;;  %s875_s18 = smov %s631_s19 }
  0xff   : > { %s876_s19 = smov %s732_s30  ;;  %s877_s20 = smov %s639_s21 }
 0x100   : > { %s878_s21 = smov %s880_s24  ;;  %21 = sbr.rel (!%p19_p6) target bundleno = 9 (0x9), region = 87 }
 0x107   :  { %353 = vsyncpa [#allocation4], 1 }
 0x108   :  { %355 = vsyncpa [#allocation4 + $0x1], 1 }
 0x109   :  { %356 = vsyncpa [#allocation5], 1 }
 0x10a   :  { %358 = vsyncpa [#allocation5 + $0x1], 1 }

</bundles_post_ra>
